<compile_context>
chip_gen: v7x
topology: tpu7x:2x2x1
jax: 0.10.0
libtpu: 0.0.40
codegen_flags: <defaults>
</compile_context>

<pallas_src>
import functools

import jax
import jax.numpy as jnp
from jax.experimental import pallas as pl
from jax.experimental.pallas import tpu as pltpu

# ----------------------------- configuration ------------------------------
VOCAB_SIZE = 64
EMBED_SIZE = 32          # in_dim
IN_DIM = EMBED_SIZE
MEM_DIM = 32
N_MAX = 8                # max children per node (zero padded via sentinel)
SEQ_LEN = 8
PAD_ID = 0


# ------------------------------- kernel -----------------------------------
def _tree_lstm_kernel(in_dim, mem_dim, n_max,
                      child_tbl_ref,          # SMEM (num_nodes, n_max) int32
                      x_ref,                  # VMEM (1, 1, in_dim)
                      w_ref,                  # VMEM (in_dim+mem_dim, 4*mem_dim)
                      b_ref,                  # VMEM (2, 4*mem_dim)
                      out_ref,                # VMEM (1, 1, 4*mem_dim)
                      state_c_ref,            # VMEM scratch (node_cap, 1, mem_dim)
                      state_h_ref):           # VMEM scratch (node_cap, 1, mem_dim)
    n = pl.program_id(0)

    # Zero the resident state (incl. the sentinel row) at the first node.
    @pl.when(n == 0)
    def _init():
        state_c_ref[...] = jnp.zeros_like(state_c_ref)
        state_h_ref[...] = jnp.zeros_like(state_h_ref)

    # Gather up to n_max children from the resident state scratch.  Missing
    # children index the zero sentinel row, so padding is exact.
    ch_h = jnp.concatenate(
        [state_h_ref[child_tbl_ref[n, k]] for k in range(n_max)], axis=0)
    ch_c = jnp.concatenate(
        [state_c_ref[child_tbl_ref[n, k]] for k in range(n_max)], axis=0)

    x = x_ref[0]                                                 # (1, in_dim)

    # Two fused lane-dense matmuls:
    #   a  = x @ [w_ioux | w_fx]     + [b_ioux + b_iouh | b_fx]   (1, 4m)
    #   bm = ch_h @ [w_iouh | w_fh]  + [0               | b_fh ]  (n_max, 4m)
    a = (jnp.dot(x, w_ref[0:in_dim, :], preferred_element_type=jnp.float32)
         + b_ref[0:1, :])
    bm = (jnp.dot(ch_h, w_ref[in_dim:in_dim + mem_dim, :],
                  preferred_element_type=jnp.float32)
          + b_ref[1:2, :])

    # iou uses child_h_sum: row-sum of the iou columns of bm (padded rows are
    # exactly zero there since their bias columns are zero).
    iou = a[:, :3 * mem_dim] + jnp.sum(bm[:, :3 * mem_dim], axis=0,
                                       keepdims=True)            # (1, 3m)
    i = jax.nn.sigmoid(iou[:, 0 * mem_dim:1 * mem_dim])
    o = jax.nn.sigmoid(iou[:, 1 * mem_dim:2 * mem_dim])
    u = jnp.tanh(iou[:, 2 * mem_dim:3 * mem_dim])

    # Per-child forget gates; padded rows have ch_c == 0 so f*c == 0 exactly.
    f = jax.nn.sigmoid(bm[:, 3 * mem_dim:] + a[:, 3 * mem_dim:])  # (n_max, m)
    c = i * u + jnp.sum(f * ch_c, axis=0, keepdims=True)          # (1, m)
    h = o * jnp.tanh(c)                                           # (1, m)

    # Persist this node's state for later parents; emit packed 128-lane row.
    state_c_ref[n] = c
    state_h_ref[n] = h
    out_ref[0] = jnp.concatenate([o, c, h, jnp.zeros_like(o)], axis=1)


def make_tree_lstm(num_nodes, in_dim, mem_dim, n_max):
    node_cap = num_nodes + 1          # +1 zero sentinel row for missing children
    out_w = 4 * mem_dim

    grid_spec = pltpu.PrefetchScalarGridSpec(
        num_scalar_prefetch=1,        # child-index table -> SMEM
        grid=(num_nodes,),
        in_specs=[
            pl.BlockSpec((1, 1, in_dim), lambda n, ct: (n, 0, 0)),            # x
            pl.BlockSpec((in_dim + mem_dim, out_w), lambda n, ct: (0, 0)),    # W
            pl.BlockSpec((2, out_w), lambda n, ct: (0, 0)),                   # b
        ],
        out_specs=pl.BlockSpec((1, 1, out_w), lambda n, ct: (n, 0, 0)),
        scratch_shapes=[
            pltpu.VMEM((node_cap, 1, mem_dim), jnp.float32),   # state_c
            pltpu.VMEM((node_cap, 1, mem_dim), jnp.float32),   # state_h
        ],
    )

    call = pl.pallas_call(
        functools.partial(_tree_lstm_kernel, in_dim, mem_dim, n_max),
        out_shape=jax.ShapeDtypeStruct((num_nodes, 1, out_w), jnp.float32),
        grid_spec=grid_spec,
        compiler_params=pltpu.CompilerParams(
            dimension_semantics=("arbitrary",)),   # sequential dependency
    )

    @jax.jit
    def run(child_tbl, x_nodes, w_packed, b_packed):
        return call(child_tbl, x_nodes, w_packed, b_packed)

    return run


# ------------------------------- glue --------------------------------------
class Tree:
    def __init__(self, idx, children=()):
        self.idx = idx
        self.children = list(children)
        self.state = None

    @property
    def num_children(self):
        return len(self.children)


def pack_params(p):
    """Fuse the four linears into two lane-dense matmuls + one bias buffer."""
    wx = jnp.concatenate([p["w_ioux"], p["w_fx"]], axis=1)       # (in, 4m)
    wh = jnp.concatenate([p["w_iouh"], p["w_fh"]], axis=1)       # (m,  4m)
    w_packed = jnp.concatenate([wx, wh], axis=0)                 # (in+m, 4m)
    b0 = jnp.concatenate([p["b_ioux"] + p["b_iouh"], p["b_fx"]], axis=1)
    b1 = jnp.concatenate([jnp.zeros((1, 3 * MEM_DIM), jnp.float32),
                          p["b_fh"]], axis=1)
    b_packed = jnp.concatenate([b0, b1], axis=0)                 # (2, 4m)
    return w_packed, b_packed


def tree_encode(tree, token_ids, params):
    """Whole tree in one pallas_call. Host-side glue builds the topo tables."""
    nodes = []

    def number(node):
        for ch in node.children:
            number(ch)
        node.topo = len(nodes)
        nodes.append(node)

    number(tree)
    num_nodes = len(nodes)
    sentinel = num_nodes                     # zero row in the state scratch

    child_tbl = [[ch.topo for ch in nd.children]
                 + [sentinel] * (N_MAX - nd.num_children) for nd in nodes]
    child_tbl = jnp.array(child_tbl, jnp.int32)                  # (N, N_MAX)
    token_order = jnp.array([nd.idx for nd in nodes], jnp.int32)

    embedding = params["embed"][token_ids]                       # (seq, in_dim)
    x_nodes = embedding[token_order].reshape(num_nodes, 1, IN_DIM)

    w_packed, b_packed = pack_params(params)

    run = make_tree_lstm(num_nodes, IN_DIM, MEM_DIM, N_MAX)
    out = run(child_tbl, x_nodes, w_packed, b_packed)            # (N, 1, 4m)

    root = out[num_nodes - 1, 0]                                 # post-order: root last
    o = root[:MEM_DIM].reshape(1, MEM_DIM)
    c = root[MEM_DIM:2 * MEM_DIM].reshape(1, MEM_DIM)
    h = root[2 * MEM_DIM:3 * MEM_DIM].reshape(1, MEM_DIM)
    return o, c, h


# --------------------------- pure-JAX reference ----------------------------
def node_forward_ref(x, child_c, child_h, p):
    child_h_sum = jnp.sum(child_h, axis=0, keepdims=True)
    iou = (x @ p["w_ioux"] + p["b_ioux"]
           + child_h_sum @ p["w_iouh"] + p["b_iouh"])
    i = jax.nn.sigmoid(iou[:, :MEM_DIM])
    o = jax.nn.sigmoid(iou[:, MEM_DIM:2 * MEM_DIM])
    u = jnp.tanh(iou[:, 2 * MEM_DIM:])
    f = jax.nn.sigmoid(child_h @ p["w_fh"] + p["b_fh"]
                       + x @ p["w_fx"] + p["b_fx"])
    fc = f * child_c
    c = i * u + jnp.sum(fc, axis=0, keepdims=True)
    h = o * jnp.tanh(c)
    return o, c, h


def tree_encode_ref(tree, token_ids, params):
    embedding = params["embed"][token_ids]

    def rec(node):
        for ch in node.children:
            rec(ch)
        if node.num_children == 0:
            cc = jnp.zeros((1, MEM_DIM), jnp.float32)
            hh = jnp.zeros((1, MEM_DIM), jnp.float32)
        else:
            cc = jnp.concatenate([ch.state[1] for ch in node.children], axis=0)
            hh = jnp.concatenate([ch.state[2] for ch in node.children], axis=0)
        x = embedding[node.idx].reshape(1, IN_DIM)
        node.state = node_forward_ref(x, cc, hh, params)
        return node.state

    return rec(tree)


def init_params(key):
    ks = jax.random.split(key, 9)
    s = 0.1
    return {
        "embed":  jax.random.normal(ks[0], (VOCAB_SIZE, EMBED_SIZE), jnp.float32) * s,
        # weights stored pre-transposed: [in_features, out_features]
        "w_ioux": jax.random.normal(ks[1], (IN_DIM, 3 * MEM_DIM), jnp.float32) * s,
        "b_ioux": jax.random.normal(ks[2], (1, 3 * MEM_DIM), jnp.float32) * s,
        "w_iouh": jax.random.normal(ks[3], (MEM_DIM, 3 * MEM_DIM), jnp.float32) * s,
        "b_iouh": jax.random.normal(ks[4], (1, 3 * MEM_DIM), jnp.float32) * s,
        "w_fx":   jax.random.normal(ks[5], (IN_DIM, MEM_DIM), jnp.float32) * s,
        "b_fx":   jax.random.normal(ks[6], (1, MEM_DIM), jnp.float32) * s,
        "w_fh":   jax.random.normal(ks[7], (MEM_DIM, MEM_DIM), jnp.float32) * s,
        "b_fh":   jax.random.normal(ks[8], (1, MEM_DIM), jnp.float32) * s,
    }


if __name__ == "__main__":
    key = jax.random.PRNGKey(0)
    kp, kt = jax.random.split(key)
    params = init_params(kp)

    # deterministic token ids (avoid PAD_ID for content tokens)
    token_ids = jax.random.randint(kt, (SEQ_LEN,), 1, VOCAB_SIZE)

    # small synthetic tree:            root(0)
    #                                /    |    \
    #                              n(1)  n(2)  leaf(5)
    #                             /  \      \
    #                         leaf(3) leaf(4) leaf(6)
    tree = Tree(0, [
        Tree(1, [Tree(3), Tree(4)]),
        Tree(2, [Tree(6)]),
        Tree(5),
    ])

    o, c, h = tree_encode(tree, token_ids, params)
    jax.block_until_ready((o, c, h))

    # correctness check against a pure-JAX reference walk of the same tree
    ref_tree = Tree(0, [
        Tree(1, [Tree(3), Tree(4)]),
        Tree(2, [Tree(6)]),
        Tree(5),
    ])
    tree_encode_ref(ref_tree, token_ids, params)
    o_r, c_r, h_r = ref_tree.state

    assert jnp.allclose(o, o_r, atol=1e-5), "o mismatch"
    assert jnp.allclose(c, c_r, atol=1e-5), "c mismatch"
    assert jnp.allclose(h, h_r, atol=1e-5), "h mismatch"

    print("KERNEL_OK")
</pallas_src>

<mosaic_0001>
module attributes {stable_mosaic.version = 11 : i64} {
  func.func @_tree_lstm_kernel(%arg0: i32, %arg1: memref<7x8xi32, #tpu.memory_space<smem>>, %arg2: memref<1x1x32xf32, #tpu.memory_space<vmem>>, %arg3: memref<64x128xf32, #tpu.memory_space<vmem>>, %arg4: memref<2x128xf32, #tpu.memory_space<vmem>>, %arg5: memref<1x1x128xf32, #tpu.memory_space<vmem>>, %arg6: memref<8x1x32xf32, #tpu.memory_space<vmem>>, %arg7: memref<8x1x32xf32, #tpu.memory_space<vmem>>) attributes {dimension_semantics = [#tpu.dimension_semantics<arbitrary>], iteration_bounds = array<i64: 7>, scalar_prefetch = 1 : i64, scratch_operands = 2 : i64, tpu.core_type = #tpu.core_type<tc>, window_params = [{transform_indices = @transform_0, window_bounds = array<i64: 1, 1, 32>}, {pipeline_mode = #tpu.pipeline_mode<synchronous>, transform_indices = @transform_1, window_bounds = array<i64: 64, 128>}, {pipeline_mode = #tpu.pipeline_mode<synchronous>, transform_indices = @transform_2, window_bounds = array<i64: 2, 128>}, {transform_indices = @transform_3, window_bounds = array<i64: 1, 1, 128>}]} {
    %c0_i32 = arith.constant 0 : i32
    %0 = arith.cmpi eq, %arg0, %c0_i32 : i32
    %1 = arith.extui %0 : i1 to i32
    %c0_i32_0 = arith.constant 0 : i32
    %2 = arith.cmpi ne, %1, %c0_i32_0 : i32
    scf.if %2 {
      %cst_65 = arith.constant 0.000000e+00 : f32
      %144 = vector.broadcast %cst_65 : f32 to vector<8x1x32xf32>
      %c0_66 = arith.constant 0 : index
      %c0_67 = arith.constant 0 : index
      %c0_68 = arith.constant 0 : index
      %145 = vector.load %arg6[%c0_66, %c0_67, %c0_68] : memref<8x1x32xf32, #tpu.memory_space<vmem>>, vector<8x1x32xf32>
      tpu.vector_store %arg6[%c0_66, %c0_67, %c0_68], %144 {strides = array<i32>} : memref<8x1x32xf32, #tpu.memory_space<vmem>>, vector<8x1x32xf32>,
      %cst_69 = arith.constant 0.000000e+00 : f32
      %146 = vector.broadcast %cst_69 : f32 to vector<8x1x32xf32>
      %c0_70 = arith.constant 0 : index
      %c0_71 = arith.constant 0 : index
      %c0_72 = arith.constant 0 : index
      %147 = vector.load %arg7[%c0_70, %c0_71, %c0_72] : memref<8x1x32xf32, #tpu.memory_space<vmem>>, vector<8x1x32xf32>
      tpu.vector_store %arg7[%c0_70, %c0_71, %c0_72], %146 {strides = array<i32>} : memref<8x1x32xf32, #tpu.memory_space<vmem>>, vector<8x1x32xf32>,
    } else {
    }
    %3 = arith.index_cast %arg0 : i32 to index
    %c0 = arith.constant 0 : index
    %4 = memref.load %arg1[%3, %c0] : memref<7x8xi32, #tpu.memory_space<smem>>
    %5 = arith.index_cast %4 : i32 to index
    %c0_1 = arith.constant 0 : index
    %c0_2 = arith.constant 0 : index
    %6 = vector.load %arg7[%5, %c0_1, %c0_2] : memref<8x1x32xf32, #tpu.memory_space<vmem>>, vector<1x1x32xf32>
    %7 = vector.shape_cast %6 : vector<1x1x32xf32> to vector<1x32xf32>
    %8 = arith.index_cast %arg0 : i32 to index
    %c1 = arith.constant 1 : index
    %9 = memref.load %arg1[%8, %c1] : memref<7x8xi32, #tpu.memory_space<smem>>
    %10 = arith.index_cast %9 : i32 to index
    %c0_3 = arith.constant 0 : index
    %c0_4 = arith.constant 0 : index
    %11 = vector.load %arg7[%10, %c0_3, %c0_4] : memref<8x1x32xf32, #tpu.memory_space<vmem>>, vector<1x1x32xf32>
    %12 = vector.shape_cast %11 : vector<1x1x32xf32> to vector<1x32xf32>
    %13 = arith.index_cast %arg0 : i32 to index
    %c2 = arith.constant 2 : index
    %14 = memref.load %arg1[%13, %c2] : memref<7x8xi32, #tpu.memory_space<smem>>
    %15 = arith.index_cast %14 : i32 to index
    %c0_5 = arith.constant 0 : index
    %c0_6 = arith.constant 0 : index
    %16 = vector.load %arg7[%15, %c0_5, %c0_6] : memref<8x1x32xf32, #tpu.memory_space<vmem>>, vector<1x1x32xf32>
    %17 = vector.shape_cast %16 : vector<1x1x32xf32> to vector<1x32xf32>
    %18 = arith.index_cast %arg0 : i32 to index
    %c3 = arith.constant 3 : index
    %19 = memref.load %arg1[%18, %c3] : memref<7x8xi32, #tpu.memory_space<smem>>
    %20 = arith.index_cast %19 : i32 to index
    %c0_7 = arith.constant 0 : index
    %c0_8 = arith.constant 0 : index
    %21 = vector.load %arg7[%20, %c0_7, %c0_8] : memref<8x1x32xf32, #tpu.memory_space<vmem>>, vector<1x1x32xf32>
    %22 = vector.shape_cast %21 : vector<1x1x32xf32> to vector<1x32xf32>
    %23 = arith.index_cast %arg0 : i32 to index
    %c4 = arith.constant 4 : index
    %24 = memref.load %arg1[%23, %c4] : memref<7x8xi32, #tpu.memory_space<smem>>
    %25 = arith.index_cast %24 : i32 to index
    %c0_9 = arith.constant 0 : index
    %c0_10 = arith.constant 0 : index
    %26 = vector.load %arg7[%25, %c0_9, %c0_10] : memref<8x1x32xf32, #tpu.memory_space<vmem>>, vector<1x1x32xf32>
    %27 = vector.shape_cast %26 : vector<1x1x32xf32> to vector<1x32xf32>
    %28 = arith.index_cast %arg0 : i32 to index
    %c5 = arith.constant 5 : index
    %29 = memref.load %arg1[%28, %c5] : memref<7x8xi32, #tpu.memory_space<smem>>
    %30 = arith.index_cast %29 : i32 to index
    %c0_11 = arith.constant 0 : index
    %c0_12 = arith.constant 0 : index
    %31 = vector.load %arg7[%30, %c0_11, %c0_12] : memref<8x1x32xf32, #tpu.memory_space<vmem>>, vector<1x1x32xf32>
    %32 = vector.shape_cast %31 : vector<1x1x32xf32> to vector<1x32xf32>
    %33 = arith.index_cast %arg0 : i32 to index
    %c6 = arith.constant 6 : index
    %34 = memref.load %arg1[%33, %c6] : memref<7x8xi32, #tpu.memory_space<smem>>
    %35 = arith.index_cast %34 : i32 to index
    %c0_13 = arith.constant 0 : index
    %c0_14 = arith.constant 0 : index
    %36 = vector.load %arg7[%35, %c0_13, %c0_14] : memref<8x1x32xf32, #tpu.memory_space<vmem>>, vector<1x1x32xf32>
    %37 = vector.shape_cast %36 : vector<1x1x32xf32> to vector<1x32xf32>
    %38 = arith.index_cast %arg0 : i32 to index
    %c7 = arith.constant 7 : index
    %39 = memref.load %arg1[%38, %c7] : memref<7x8xi32, #tpu.memory_space<smem>>
    %40 = arith.index_cast %39 : i32 to index
    %c0_15 = arith.constant 0 : index
    %c0_16 = arith.constant 0 : index
    %41 = vector.load %arg7[%40, %c0_15, %c0_16] : memref<8x1x32xf32, #tpu.memory_space<vmem>>, vector<1x1x32xf32>
    %42 = vector.shape_cast %41 : vector<1x1x32xf32> to vector<1x32xf32>
    %43 = tpu.concatenate %7, %12, %17, %22, %27, %32, %37, %42 in 0 : vector<1x32xf32>, vector<1x32xf32>, vector<1x32xf32>, vector<1x32xf32>, vector<1x32xf32>, vector<1x32xf32>, vector<1x32xf32>, vector<1x32xf32> -> vector<8x32xf32>
    %44 = arith.index_cast %arg0 : i32 to index
    %c0_17 = arith.constant 0 : index
    %45 = memref.load %arg1[%44, %c0_17] : memref<7x8xi32, #tpu.memory_space<smem>>
    %46 = arith.index_cast %45 : i32 to index
    %c0_18 = arith.constant 0 : index
    %c0_19 = arith.constant 0 : index
    %47 = vector.load %arg6[%46, %c0_18, %c0_19] : memref<8x1x32xf32, #tpu.memory_space<vmem>>, vector<1x1x32xf32>
    %48 = vector.shape_cast %47 : vector<1x1x32xf32> to vector<1x32xf32>
    %49 = arith.index_cast %arg0 : i32 to index
    %c1_20 = arith.constant 1 : index
    %50 = memref.load %arg1[%49, %c1_20] : memref<7x8xi32, #tpu.memory_space<smem>>
    %51 = arith.index_cast %50 : i32 to index
    %c0_21 = arith.constant 0 : index
    %c0_22 = arith.constant 0 : index
    %52 = vector.load %arg6[%51, %c0_21, %c0_22] : memref<8x1x32xf32, #tpu.memory_space<vmem>>, vector<1x1x32xf32>
    %53 = vector.shape_cast %52 : vector<1x1x32xf32> to vector<1x32xf32>
    %54 = arith.index_cast %arg0 : i32 to index
    %c2_23 = arith.constant 2 : index
    %55 = memref.load %arg1[%54, %c2_23] : memref<7x8xi32, #tpu.memory_space<smem>>
    %56 = arith.index_cast %55 : i32 to index
    %c0_24 = arith.constant 0 : index
    %c0_25 = arith.constant 0 : index
    %57 = vector.load %arg6[%56, %c0_24, %c0_25] : memref<8x1x32xf32, #tpu.memory_space<vmem>>, vector<1x1x32xf32>
    %58 = vector.shape_cast %57 : vector<1x1x32xf32> to vector<1x32xf32>
    %59 = arith.index_cast %arg0 : i32 to index
    %c3_26 = arith.constant 3 : index
    %60 = memref.load %arg1[%59, %c3_26] : memref<7x8xi32, #tpu.memory_space<smem>>
    %61 = arith.index_cast %60 : i32 to index
    %c0_27 = arith.constant 0 : index
    %c0_28 = arith.constant 0 : index
    %62 = vector.load %arg6[%61, %c0_27, %c0_28] : memref<8x1x32xf32, #tpu.memory_space<vmem>>, vector<1x1x32xf32>
    %63 = vector.shape_cast %62 : vector<1x1x32xf32> to vector<1x32xf32>
    %64 = arith.index_cast %arg0 : i32 to index
    %c4_29 = arith.constant 4 : index
    %65 = memref.load %arg1[%64, %c4_29] : memref<7x8xi32, #tpu.memory_space<smem>>
    %66 = arith.index_cast %65 : i32 to index
    %c0_30 = arith.constant 0 : index
    %c0_31 = arith.constant 0 : index
    %67 = vector.load %arg6[%66, %c0_30, %c0_31] : memref<8x1x32xf32, #tpu.memory_space<vmem>>, vector<1x1x32xf32>
    %68 = vector.shape_cast %67 : vector<1x1x32xf32> to vector<1x32xf32>
    %69 = arith.index_cast %arg0 : i32 to index
    %c5_32 = arith.constant 5 : index
    %70 = memref.load %arg1[%69, %c5_32] : memref<7x8xi32, #tpu.memory_space<smem>>
    %71 = arith.index_cast %70 : i32 to index
    %c0_33 = arith.constant 0 : index
    %c0_34 = arith.constant 0 : index
    %72 = vector.load %arg6[%71, %c0_33, %c0_34] : memref<8x1x32xf32, #tpu.memory_space<vmem>>, vector<1x1x32xf32>
    %73 = vector.shape_cast %72 : vector<1x1x32xf32> to vector<1x32xf32>
    %74 = arith.index_cast %arg0 : i32 to index
    %c6_35 = arith.constant 6 : index
    %75 = memref.load %arg1[%74, %c6_35] : memref<7x8xi32, #tpu.memory_space<smem>>
    %76 = arith.index_cast %75 : i32 to index
    %c0_36 = arith.constant 0 : index
    %c0_37 = arith.constant 0 : index
    %77 = vector.load %arg6[%76, %c0_36, %c0_37] : memref<8x1x32xf32, #tpu.memory_space<vmem>>, vector<1x1x32xf32>
    %78 = vector.shape_cast %77 : vector<1x1x32xf32> to vector<1x32xf32>
    %79 = arith.index_cast %arg0 : i32 to index
    %c7_38 = arith.constant 7 : index
    %80 = memref.load %arg1[%79, %c7_38] : memref<7x8xi32, #tpu.memory_space<smem>>
    %81 = arith.index_cast %80 : i32 to index
    %c0_39 = arith.constant 0 : index
    %c0_40 = arith.constant 0 : index
    %82 = vector.load %arg6[%81, %c0_39, %c0_40] : memref<8x1x32xf32, #tpu.memory_space<vmem>>, vector<1x1x32xf32>
    %83 = vector.shape_cast %82 : vector<1x1x32xf32> to vector<1x32xf32>
    %84 = tpu.concatenate %48, %53, %58, %63, %68, %73, %78, %83 in 0 : vector<1x32xf32>, vector<1x32xf32>, vector<1x32xf32>, vector<1x32xf32>, vector<1x32xf32>, vector<1x32xf32>, vector<1x32xf32>, vector<1x32xf32> -> vector<8x32xf32>
    %c0_41 = arith.constant 0 : index
    %c0_42 = arith.constant 0 : index
    %c0_43 = arith.constant 0 : index
    %85 = vector.load %arg2[%c0_41, %c0_42, %c0_43] : memref<1x1x32xf32, #tpu.memory_space<vmem>>, vector<1x1x32xf32>
    %86 = vector.shape_cast %85 : vector<1x1x32xf32> to vector<1x32xf32>
    %c0_44 = arith.constant 0 : index
    %c0_45 = arith.constant 0 : index
    %87 = vector.load %arg3[%c0_44, %c0_45] : memref<64x128xf32, #tpu.memory_space<vmem>>, vector<32x128xf32>
    %cst = arith.constant dense<0.000000e+00> : vector<1x128xf32>
    %88 = tpu.matmul %86, %87, %cst {dimension_numbers = #tpu.dot_dimension_numbers<[1], [0], [0], [1], [0, 0, 1, 1], [], []>} : vector<1x32xf32>, vector<32x128xf32>, vector<1x128xf32> -> vector<1x128xf32>
    %c0_46 = arith.constant 0 : index
    %c0_47 = arith.constant 0 : index
    %89 = vector.load %arg4[%c0_46, %c0_47] : memref<2x128xf32, #tpu.memory_space<vmem>>, vector<1x128xf32>
    %90 = arith.addf %88, %89 : vector<1x128xf32>
    %c32 = arith.constant 32 : index
    %c0_48 = arith.constant 0 : index
    %91 = vector.load %arg3[%c32, %c0_48] : memref<64x128xf32, #tpu.memory_space<vmem>>, vector<32x128xf32>
    %cst_49 = arith.constant dense<0.000000e+00> : vector<8x128xf32>
    %92 = tpu.matmul %43, %91, %cst_49 {dimension_numbers = #tpu.dot_dimension_numbers<[1], [0], [0], [1], [0, 0, 1, 1], [], []>} : vector<8x32xf32>, vector<32x128xf32>, vector<8x128xf32> -> vector<8x128xf32>
    %c1_50 = arith.constant 1 : index
    %c0_51 = arith.constant 0 : index
    %93 = vector.load %arg4[%c1_50, %c0_51] : memref<2x128xf32, #tpu.memory_space<vmem>>, vector<1x128xf32>
    %94 = vector.broadcast %93 : vector<1x128xf32> to vector<8x128xf32>
    %95 = arith.addf %92, %94 : vector<8x128xf32>
    %96 = vector.extract_strided_slice %90 {offsets = [0, 0], sizes = [1, 96], strides = [1, 1]} : vector<1x128xf32> to vector<1x96xf32>
    %97 = vector.extract_strided_slice %95 {offsets = [0, 0], sizes = [8, 96], strides = [1, 1]} : vector<8x128xf32> to vector<8x96xf32>
    %cst_52 = arith.constant dense<0.000000e+00> : vector<96xf32>
    %98 = vector.multi_reduction <add>, %97, %cst_52 [0] : vector<8x96xf32> to vector<96xf32>
    %99 = vector.shape_cast %98 : vector<96xf32> to vector<1x96xf32>
    %100 = arith.addf %96, %99 : vector<1x96xf32>
    %101 = vector.extract_strided_slice %100 {offsets = [0, 0], sizes = [1, 32], strides = [1, 1]} : vector<1x96xf32> to vector<1x32xf32>
    %102 = arith.negf %101 : vector<1x32xf32>
    %103 = math.exp %102 : vector<1x32xf32>
    %cst_53 = arith.constant 1.000000e+00 : f32
    %104 = vector.broadcast %cst_53 : f32 to vector<1x32xf32>
    %105 = arith.addf %104, %103 : vector<1x32xf32>
    %106 = arith.divf %104, %105 : vector<1x32xf32>
    %107 = vector.extract_strided_slice %100 {offsets = [0, 32], sizes = [1, 32], strides = [1, 1]} : vector<1x96xf32> to vector<1x32xf32>
    %108 = arith.negf %107 : vector<1x32xf32>
    %109 = math.exp %108 : vector<1x32xf32>
    %cst_54 = arith.constant 1.000000e+00 : f32
    %110 = vector.broadcast %cst_54 : f32 to vector<1x32xf32>
    %111 = arith.addf %110, %109 : vector<1x32xf32>
    %112 = arith.divf %110, %111 : vector<1x32xf32>
    %113 = vector.extract_strided_slice %100 {offsets = [0, 64], sizes = [1, 32], strides = [1, 1]} : vector<1x96xf32> to vector<1x32xf32>
    %114 = math.tanh %113 : vector<1x32xf32>
    %115 = vector.extract_strided_slice %95 {offsets = [0, 96], sizes = [8, 32], strides = [1, 1]} : vector<8x128xf32> to vector<8x32xf32>
    %116 = vector.extract_strided_slice %90 {offsets = [0, 96], sizes = [1, 32], strides = [1, 1]} : vector<1x128xf32> to vector<1x32xf32>
    %117 = vector.broadcast %116 : vector<1x32xf32> to vector<8x32xf32>
    %118 = arith.addf %115, %117 : vector<8x32xf32>
    %119 = arith.negf %118 : vector<8x32xf32>
    %120 = math.exp %119 : vector<8x32xf32>
    %cst_55 = arith.constant 1.000000e+00 : f32
    %121 = vector.broadcast %cst_55 : f32 to vector<8x32xf32>
    %122 = arith.addf %121, %120 : vector<8x32xf32>
    %123 = arith.divf %121, %122 : vector<8x32xf32>
    %124 = arith.mulf %106, %114 : vector<1x32xf32>
    %125 = arith.mulf %123, %84 : vector<8x32xf32>
    %cst_56 = arith.constant dense<0.000000e+00> : vector<32xf32>
    %126 = vector.multi_reduction <add>, %125, %cst_56 [0] : vector<8x32xf32> to vector<32xf32>
    %127 = vector.shape_cast %126 : vector<32xf32> to vector<1x32xf32>
    %128 = arith.addf %124, %127 : vector<1x32xf32>
    %129 = math.tanh %128 : vector<1x32xf32>
    %130 = arith.mulf %112, %129 : vector<1x32xf32>
    %131 = arith.index_cast %arg0 : i32 to index
    %c0_57 = arith.constant 0 : index
    %c0_58 = arith.constant 0 : index
    %132 = vector.load %arg6[%131, %c0_57, %c0_58] : memref<8x1x32xf32, #tpu.memory_space<vmem>>, vector<1x1x32xf32>
    %133 = vector.shape_cast %132 : vector<1x1x32xf32> to vector<1x32xf32>
    %134 = vector.shape_cast %128 : vector<1x32xf32> to vector<1x1x32xf32>
    tpu.vector_store %arg6[%131, %c0_57, %c0_58], %134 {strides = array<i32>} : memref<8x1x32xf32, #tpu.memory_space<vmem>>, vector<1x1x32xf32>,
    %135 = arith.index_cast %arg0 : i32 to index
    %c0_59 = arith.constant 0 : index
    %c0_60 = arith.constant 0 : index
    %136 = vector.load %arg7[%135, %c0_59, %c0_60] : memref<8x1x32xf32, #tpu.memory_space<vmem>>, vector<1x1x32xf32>
    %137 = vector.shape_cast %136 : vector<1x1x32xf32> to vector<1x32xf32>
    %138 = vector.shape_cast %130 : vector<1x32xf32> to vector<1x1x32xf32>
    tpu.vector_store %arg7[%135, %c0_59, %c0_60], %138 {strides = array<i32>} : memref<8x1x32xf32, #tpu.memory_space<vmem>>, vector<1x1x32xf32>,
    %cst_61 = arith.constant 0.000000e+00 : f32
    %139 = vector.broadcast %cst_61 : f32 to vector<1x32xf32>
    %140 = tpu.concatenate %112, %128, %130, %139 in 1 : vector<1x32xf32>, vector<1x32xf32>, vector<1x32xf32>, vector<1x32xf32> -> vector<1x128xf32>
    %c0_62 = arith.constant 0 : index
    %c0_63 = arith.constant 0 : index
    %c0_64 = arith.constant 0 : index
    %141 = vector.load %arg5[%c0_62, %c0_63, %c0_64] : memref<1x1x128xf32, #tpu.memory_space<vmem>>, vector<1x1x128xf32>
    %142 = vector.shape_cast %141 : vector<1x1x128xf32> to vector<1x128xf32>
    %143 = vector.shape_cast %140 : vector<1x128xf32> to vector<1x1x128xf32>
    tpu.vector_store %arg5[%c0_62, %c0_63, %c0_64], %143 {strides = array<i32>} : memref<1x1x128xf32, #tpu.memory_space<vmem>>, vector<1x1x128xf32>,
    return
  }
  func.func @transform_0(%arg0: i32, %arg1: memref<7x8xi32, #tpu.memory_space<smem>>) -> (i32, i32, i32) {
    %c0_i32 = arith.constant 0 : i32
    %c0_i32_0 = arith.constant 0 : i32
    %c0_i32_1 = arith.constant 0 : i32
    return %arg0, %c0_i32, %c0_i32_0 : i32, i32, i32
  }
  func.func @transform_1(%arg0: i32, %arg1: memref<7x8xi32, #tpu.memory_space<smem>>) -> (i32, i32) {
    %c0_i32 = arith.constant 0 : i32
    %c0_i32_0 = arith.constant 0 : i32
    %c0_i32_1 = arith.constant 0 : i32
    return %c0_i32, %c0_i32_0 : i32, i32
  }
  func.func @transform_2(%arg0: i32, %arg1: memref<7x8xi32, #tpu.memory_space<smem>>) -> (i32, i32) {
    %c0_i32 = arith.constant 0 : i32
    %c0_i32_0 = arith.constant 0 : i32
    %c0_i32_1 = arith.constant 0 : i32
    return %c0_i32, %c0_i32_0 : i32, i32
  }
  func.func @transform_3(%arg0: i32, %arg1: memref<7x8xi32, #tpu.memory_space<smem>>) -> (i32, i32, i32) {
    %c0_i32 = arith.constant 0 : i32
    %c0_i32_0 = arith.constant 0 : i32
    %c0_i32_1 = arith.constant 0 : i32
    return %arg0, %c0_i32, %c0_i32_0 : i32, i32, i32
  }
}

</mosaic_0001>

<bundles_post_ra>
// kernel: run.1
= control target key start
LH: loop header
LB: loop body
LE: loop exit
PB: predicated region body
PF: predicated region fallthrough
CT: control target
= control target key end

     0   :  { %s1365_s0 = inlined_call_operand.hbm [shape: s32[7,8], index: 0, kind: input, shape index: {}]   ;;  %s1366_s1 = inlined_call_operand.hbm [shape: f32[7,1,32], index: 1, kind: input, shape index: {}]   ;;  %s1367_s2 = inlined_call_operand.hbm [shape: f32[64,128], index: 2, kind: input, shape index: {}]   ;;  %s1368_s3 = inlined_call_operand.vmem [shape: f32[2,128], index: 3, kind: input, shape index: {}]   ;;  %s1369_s4 = inlined_call_operand.hbm [shape: f32[7,1,128], index: 4, kind: output, shape index: {}]  }
   0x1   :  { %s885_s17 = scalar_lea.hbm %s1365_s0, 128 }
   0x2   :  { %p886_p0 = scmp.ne.s32.totalorder %s1365_s0, %s885_s17  ;;  %p889_p1 = scmp.lt.u32.totalorder %s885_s17, %s1365_s0 }
   0x4   :  { %p891_p2 = pnand %p889_p1, %p886_p0 }
   0x6   :  { %894 = shalt.err (!%p891_p2)  }
   0x7   :  { %s1027_s22 = smov [#allocation5]  }
   0x8   :  { %10 = dma.hbm_to_smem %s1365_s0, 128, %s1027_s22, [#allocation4] }
   0x9   :  { %997 = dma.done.wait [#allocation4], 128 }
   0xa   :  { %998 = vsyncadd [#allocation4], 4294967168 }
   0xb   :  { %12 = sfence }
   0xc   :  { %13 = vsyncpa [#allocation7], 0 }
   0xd   :  { %15 = vsyncpa [#allocation7 + $0x1], 0 }
   0xe   :  { %16 = vsyncpa [#allocation10], 0 }
   0xf   :  { %17 = vsyncpa [#allocation8], 0 }
  0x10   :  { %19 = vsyncpa [#allocation8 + $0x1], 0  ;;  %s1077_s25 = smov 0   ;;  %s1079_s26 = smov 0  }
  0x11   :  { %s1081_s27 = smov 0   ;;  %s1083_s28 = smov 0  }
  0x12 LB: > { %s1098_s0 = sadd.s32 4294967295, %s1025_s28   ;;  %s723_s29 = sadd.s32 4294967294, %s1025_s28   ;;  %s1025_s28 = sphi %s1083_s28, %s1389_s28   ;;  %s1021_s27 = sphi %s1081_s27, %s1388_s27   ;;  %s1017_s26 = sphi %s1079_s26, %s1387_s26   ;;  %s1013_s25 = sphi %s1077_s25, %s1386_s25  }
  0x13   : > { %p45_p3 = scmp.ne.s32.totalorder %s1017_s26, %s1013_s25  ;;  %p1370_p4 = scmp.eq.s32.totalorder %s1098_s0, 0 }
  0x14   : > { %p117_p6 = scmp.eq.s32.totalorder %s723_s29, 6  ;;  %p724_p8 = scmp.ge.s32.totalorder %s1025_s28, 1 }
  0x15   : > { %p1107_p7 = por %p1370_p4, %p45_p3  ;;  %p124_p10 = scmp.lt.s32.totalorder %s1025_s28, 8 }
  0x16   : > { %p1112_p9 = por %p117_p6, %p45_p3  ;;  %s1028_s7 = smov [#allocation9]  }
  0x17   : > { %s1373_s30 = scalar_select %p1107_p7, 1, 0 }
  0x18   : > { %s1374_s5 = scalar_select %p1112_p9, 1, 0 }
  0x19   : > { %p1118_p12 = pnand %p724_p8, %p124_p10  ;;  %s136_s8 = sshll.u32 %s1028_s7, 4  ;;  %s137_s8 = int_to_ptr.vmem [resolvable:$true] %s136_s8 }
  0x1a   : > { %s1131_s10 = sadd.s32 1, %s1025_s28   ;;  %s32_s11 = sadd.s32 1, %s1021_s27 }
  0x1b   : > { %s1375_s6 = scalar_select %p1118_p12, 1, 0 }
  0x1c   : > { %p814_p13 = pneg %p1118_p12  ;;  %s29_s12 = ssub.s32 %s1025_s28, %s1131_s10 }
  0x1d   : > { %s895_s15 = scalar_lea.hbm %s1367_s2, 1024 }
  0x1e   : > { %p1126_p0 = pnand %p814_p13, %p1370_p4  ;;  %p896_p1 = scmp.ne.s32.totalorder %s1367_s2, %s895_s15 }
  0x1f   : > { %p902_p8 = scmp.lt.u32.totalorder %s895_s15, %s1367_s2 }
  0x20   : > { %p897_p2 = pneg %p1126_p0 }
  0x22   : > { %p898_p3 = pnand %p897_p2, %p896_p1 }
  0x24   : > { %p899_p6 = pneg %p898_p3 }
  0x26   : > { %p904_p10 = pnand %p902_p8, %p899_p6 }
  0x28   : > { %907 = shalt.err (!%p904_p10)
}
  0x29   : > { %s908_s20 = scalar_lea.vmem %s137_s8, 1024  ;;  %p916_p5 = scmp.lt.s32.totalorder %s137_s8, %s137_s8 }
  0x2a   : > { %p909_p13 = scmp.ne.s32.totalorder %s137_s8, %s908_s20  ;;  %p917_p9 = scmp.lt.s32.totalorder %s908_s20, %s908_s20 }
  0x2c   : > { %p911_p11 = pnand %p909_p13, %p897_p2  ;;  %p918_p7 = por %p917_p9, %p916_p5 }
  0x2e   : > { %p912_p4 = pneg %p911_p11 }
  0x30   : > { %p919_p12 = pnand %p918_p7, %p912_p4 }
  0x32   : > { %922 = shalt.err (!%p919_p12)
}
  0x33   : > { %s1029_s21 = smov 128   ;;  %s1030_s22 = smov 8  }
  0x34   : > { %817 = dma.hbm_to_vmem [thread:$0]  (!%p1126_p0), %s1367_s2, 1024, %s137_s8, [#allocation10], %s1029_s21, %s1029_s21, %s1030_s22  }
  0x35   : > { %p30_p11 = scmp.eq.s32.totalorder %s29_s12, 0  ;;  %p39_p5 = scmp.ne.s32.totalorder %s1021_s27, %s1017_s26 }
  0x36   : > { %p40_p4 = scmp.eq.s32.totalorder %s1025_s28, 0  ;;  %p827_p7 = scmp.lt.s32.totalorder %s1025_s28, 7 }
  0x37   : > { %s1157_s29 = scalar_select %p30_p11, %s1021_s27, %s32_s11  }
  0x38   : > { %p41_p9 = por %p40_p4, %p39_p5  ;;  %p1377_p12 = scmp.eq.s32.totalorder %s1098_s0, 6 }
  0x39   : > { %s153_s13 = sand.u32 1, %s1021_s27   ;;  %s727_s14 = sshll.u32 %s1025_s28, 4 }
  0x3a   : > { %p1161_p1 = por %p1377_p12, %p39_p5  ;;  %s1170_s16 = scalar_lea.hbm %s1366_s1, %s727_s14 }
  0x3b   : > { %s156_s8 = scalar_lea.vmem [#allocation6], %s153_s13  ;;  %p1174_p0 = pnand %p827_p7, %p41_p9 }
  0x3c   : > { %s163_s11 = sshll.u32 %s156_s8, 4  ;;  %s154_s17 = scalar_lea.sflag [#allocation7], %s153_s13  ;;  %s1172_s11 = int_to_ptr.vmem [resolvable:$true] %s163_s11 }
  0x3d   : > { %s923_s18 = scalar_lea.hbm %s1170_s16, 16  ;;  %p925_p3 = pneg %p1174_p0 }
  0x3e   : > { %p924_p2 = scmp.ne.s32.totalorder %s1170_s16, %s923_s18  ;;  %s928_s21 = scalar_lea.hbm %s1366_s1, 112 }
  0x3f   : > { %p929_p10 = scmp.lt.u32.totalorder %s1170_s16, %s1366_s1  ;;  %p930_p13 = scmp.lt.u32.totalorder %s928_s21, %s923_s18 }
  0x40   : > { %p926_p6 = pnand %p925_p3, %p924_p2  ;;  %p932_p5 = scmp.lt.u32.totalorder %s923_s18, %s1170_s16 }
  0x41   : > { %p931_p11 = por %p930_p13, %p929_p10 }
  0x42   : > { %p927_p8 = pneg %p926_p6 }
  0x43   : > { %p933_p4 = por %p932_p5, %p931_p11 }
  0x45   : > { %p934_p7 = pnand %p933_p4, %p927_p8 }
  0x47   : > { %937 = shalt.err (!%p934_p7)
}
  0x48   : > { %s938_s24 = scalar_lea.vmem %s1172_s11, 16  ;;  %s1031_s13 = smov [#allocation6]  }
  0x49   : > { %p939_p9 = scmp.ne.s32.totalorder %s1172_s11, %s938_s24  ;;  %s943_s14 = sshll.u32 %s1031_s13, 4  ;;  %s944_s14 = int_to_ptr.vmem [resolvable:$false] %s943_s14 }
  0x4a   : > { %s945_s15 = scalar_lea.vmem %s944_s14, 32  ;;  %p946_p6 = scmp.lt.s32.totalorder %s1172_s11, %s944_s14 }
  0x4b   : > { %p941_p12 = pnand %p939_p9, %p925_p3  ;;  %p947_p10 = scmp.lt.s32.totalorder %s945_s15, %s938_s24 }
  0x4d   : > { %p942_p2 = pneg %p941_p12  ;;  %p948_p13 = por %p947_p10, %p946_p6 }
  0x4f   : > { %p949_p11 = pnand %p948_p13, %p942_p2 }
  0x51   : > { %952 = shalt.err (!%p949_p11)
}
  0x52   : > { %821 = dma.hbm_to_vmem [thread:$0]  (!%p1174_p0), %s1170_s16, 16, %s1172_s11, %s154_s17  }
  0x53   : > { %p1380_p8 = scmp.ne.s32.totalorder %s1375_s6, 0 }
  0x54   : > { %s1206_s9 = sand.u32 (!%p1380_p8), 1, %s1017_s26   ;;  %p1381_p3 = scmp.ne.s32.totalorder (!%p1380_p8), %s1373_s30, 0 }
  0x55   : > { %172 = sbr.rel (%p1380_p8) target bundleno = 763 (0x2fb), region = 32  ;;  %s175_s8 = scalar_lea.sflag (!%p1380_p8), [#allocation7], %s1206_s9 }
  0x56   : > { %s177_s18 = scalar_lea.vmem (!%p1380_p8), [#allocation6], %s1206_s9 }
  0x5c   : > { %1000 = dma.done.wait (%p1381_p3), %s175_s8, 16  }
  0x5d   : > { %1002 = vsyncadd (%p1381_p3), %s175_s8, 4294967280  ;;  %p1382_p5 = scmp.eq.s32.totalorder %s1098_s0, 0 }
  0x5f   : > { %1004 = dma.done.wait (%p1382_p5), [#allocation10], 1024   ;;  %p1383_p0 = pmov %p1382_p5 }
  0x60   : > { %s201_s6 = scalar_lea.vmem [#allocation11], %s1206_s9  ;;  %p1384_p4 = scmp.ne.s32.totalorder %s1098_s0, 0 }
  0x61   : > { %1006 = vsyncadd (%p1383_p0), [#allocation10], 4294966272  ;;  %vm206_vm0 = vcmask (!%p1384_p4), 253952   ;;  %v1032_v0 = vmov (!%p1384_p4), 0.0  }
  0x62   : > { %205 = sbr.rel (%p1384_p4) target bundleno = 106 (0x6a), region = 44  ;;  %207 = vst.msk [vmem:[#allocation2] sm:$0x1] (!%p1384_p4), %vm206_vm0, %v1032_v0  ;;  %208 = vst.msk [vmem:[#allocation2 + $0x1] sm:$0x1] (!%p1384_p4), %vm206_vm0, %v1032_v0 }
  0x63   : > { %209 = vst.msk [vmem:[#allocation2 + $0x2] sm:$0x1] (!%p1384_p4), %vm206_vm0, %v1032_v0  ;;  %210 = vst.msk [vmem:[#allocation2 + $0x3] sm:$0x1] (!%p1384_p4), %vm206_vm0, %v1032_v0 }
  0x64   : > { %211 = vst.msk [vmem:[#allocation2 + $0x4] sm:$0x1] (!%p1384_p4), %vm206_vm0, %v1032_v0  ;;  %212 = vst.msk [vmem:[#allocation2 + $0x5] sm:$0x1] (!%p1384_p4), %vm206_vm0, %v1032_v0 }
  0x65   : > { %213 = vst.msk [vmem:[#allocation2 + $0x6] sm:$0x1] (!%p1384_p4), %vm206_vm0, %v1032_v0  ;;  %214 = vst.msk [vmem:[#allocation2 + $0x7] sm:$0x1] (!%p1384_p4), %vm206_vm0, %v1032_v0 }
  0x66   : > { %215 = vst.msk [vmem:[#allocation3] sm:$0x1] (!%p1384_p4), %vm206_vm0, %v1032_v0  ;;  %216 = vst.msk [vmem:[#allocation3 + $0x1] sm:$0x1] (!%p1384_p4), %vm206_vm0, %v1032_v0 }
  0x67   : > { %217 = vst.msk [vmem:[#allocation3 + $0x2] sm:$0x1] (!%p1384_p4), %vm206_vm0, %v1032_v0  ;;  %218 = vst.msk [vmem:[#allocation3 + $0x3] sm:$0x1] (!%p1384_p4), %vm206_vm0, %v1032_v0 }
  0x68   : > { %219 = vst.msk [vmem:[#allocation3 + $0x4] sm:$0x1] (!%p1384_p4), %vm206_vm0, %v1032_v0  ;;  %220 = vst.msk [vmem:[#allocation3 + $0x5] sm:$0x1] (!%p1384_p4), %vm206_vm0, %v1032_v0 }
  0x69   : > { %221 = vst.msk [vmem:[#allocation3 + $0x6] sm:$0x1] %vm206_vm0, %v1032_v0  ;;  %222 = vst.msk [vmem:[#allocation3 + $0x7] sm:$0x1] %vm206_vm0, %v1032_v0 }
  0x6a PF: > { %v377_v1 = vld [vmem:[#allocation9] sm:$0xff]  ;;  %v378_v2 = vld [vmem:[#allocation9 + $0x8] sm:$0xff]  ;;  %v1033_v4 = vmov 0.0|0.0   ;;  %v379_v7 = vld [vmem:[#allocation9 + $0x10] sm:$0xff]  ;;  %s1238_s30 = sshll.u32 %s1098_s0, 7  ;;  %vm1034_vm1 = vmmov 0   ;;  %v554_v46 = vlaneseq }
  0x6b   : > { %v456_v3 = vld [vmem:[#allocation9 + $0x20] sm:$0xff]  ;;  %794 = vmatprep.subr.bf16.mxu0 %v1033_v4  ;;  %v795_v5 = vpack.c.bf16 %v378_v2, %v377_v1  ;;  %800 = vmatprep.subr.bf16.mxu1 %v1033_v4  ;;  %v457_v6 = vld [vmem:[#allocation9 + $0x28] sm:$0xff]  ;;  %v380_v8 = vld [vmem:[#allocation9 + $0x18] sm:$0xff]  ;;  %v1035_v10 = vmov 0.0   ;;  %s1241_s16 = sld [smem:[#allocation5 + %s1238_s30]]  ;;  %s227_s11 = sadd.s32 1, %s1238_s30 }
  0x6c   : > { %v801_v9 = vpack.c.bf16 %v457_v6, %v456_v3  ;;  %780 = vmatprep.mubr.msk.f32.mxu0 %vm1034_vm1, %v1035_v10  ;;  %v458_v11 = vld [vmem:[#allocation9 + $0x30] sm:$0xff]  ;;  %v459_v12 = vld [vmem:[#allocation9 + $0x38] sm:$0xff]  ;;  %791 = vmatprep.mubr.msk.f32.mxu1 %vm1034_vm1, %v1035_v10  ;;  %v798_v13 = vpack.c.bf16 %v380_v8, %v379_v7  ;;  %s1244_s12 = sld [smem:[#allocation5 + %s227_s11]]  ;;  %s231_s17 = sadd.s32 2, %s1238_s30  ;;  %v376_v15 = vld [vmem:[%s177_s18] sm:$0x1] }
  0x6d   : > { %796 = vmatpush3.bf16.msra.mxu0 %v795_v5  ;;  %v804_v14 = vpack.c.bf16 %v459_v12, %v458_v11  ;;  %s1247_s19 = sld [smem:[#allocation5 + %s231_s17]]  ;;  %s235_s20 = sadd.s32 3, %s1238_s30  ;;  %vm382_vm2 = vcmask 261120   ;;  %vm297_vm3 = vcmask 1040384   ;;  %vm299_vm4 = vcmask 1041408  }
  0x6e   : > { %797 = vmatprep.subr.bf16.mxu0 %v1033_v4  ;;  %802 = vmatpush3.bf16.msra.mxu1 %v801_v9  ;;  %s1250_s21 = sld [smem:[#allocation5 + %s235_s20]]  ;;  %s239_s22 = sadd.s32 4, %s1238_s30  ;;  %vm301_vm5 = vcmask 1042432   ;;  %vm303_vm6 = vcmask 1043456   ;;  %vm305_vm7 = vcmask 1044480   ;;  %vm307_vm8 = vcmask 1045504  }
  0x6f   : > { %803 = vmatprep.subr.bf16.mxu1 %v1033_v4  ;;  %s1253_s23 = sld [smem:[#allocation5 + %s239_s22]]  ;;  %s243_s24 = sadd.s32 5, %s1238_s30  ;;  %vm309_vm9 = vcmask 1046528   ;;  %v555_v48 = vshrl.u32 %v554_v46, 7  ;;  %v381_v49 = vld [vmem:[%s1368_s3] sm:$0x1] }
  0x70   : > { %s1258_s13 = sld [smem:[#allocation5 + %s243_s24]]  ;;  %s247_s14 = sadd.s32 6, %s1238_s30  ;;  %v747_v53 = vld [vmem:[%s1368_s3 + $0x1] ss:$0 sm:$0xff]  ;;  %vm538_vm10 = vcmask 785408   ;;  %vm575_vm11 = vcmask 1048320  }
  0x71   : > { %799 = vmatpush3.bf16.msra.mxu0 %v798_v13  ;;  %s1261_s15 = sld [smem:[#allocation5 + %s247_s14]]  ;;  %s225_s8 = scalar_lea.vmem [#allocation3], %s1241_s16  ;;  %v556_v52 = vsub.s32 0, %v555_v48  ;;  %vm595_vm12 = vcmask 253952   ;;  %vm615_vm13 = vcmask 523264  }
  0x72   : > { %805 = vmatpush3.bf16.msra.mxu1 %v804_v14  ;;  %v226_v16 = vld [vmem:[%s225_s8] sm:$0x1]  ;;  %s251_s11 = sadd.s32 7, %s1238_s30  ;;  %s229_s18 = scalar_lea.vmem [#allocation3], %s1244_s12 }
  0x73   : > { %v732_v17 = vld [vmem:[%s229_s18] ss:$0 sm:$0xff]  ;;  %s1267_s17 = sld [smem:[#allocation5 + %s251_s11]]  ;;  %s233_s20 = scalar_lea.vmem [#allocation3], %s1247_s19 }
  0x74   : > { %781 = vmatmul.mubr.msk.f32.vlgmr.msra.gmra.mrb[0].mxu0 %vm382_vm2, %v376_v15  ;;  %v733_v18 = vld [vmem:[%s233_s20] ss:$0 sm:$0xff]  ;;  %v298_v19 = vsel %vm297_vm3, %v226_v16, %v732_v17  ;;  %s237_s30 = scalar_lea.vmem [#allocation3], %s1250_s21  ;;  %s311_s22 = scalar_lea.vmem [#allocation2], %s1241_s16 }
  0x75   : > { %v734_v20 = vld [vmem:[%s237_s30] ss:$0 sm:$0xff]  ;;  %v300_v21 = vsel %vm299_vm4, %v298_v19, %v733_v18  ;;  %s241_s24 = scalar_lea.vmem [#allocation3], %s1253_s23  ;;  %s313_s14 = scalar_lea.vmem [#allocation2], %s1244_s12 }
  0x76   : > { %v312_v22 = vld [vmem:[%s311_s22] sm:$0x1]  ;;  %v302_v24 = vsel %vm301_vm5, %v300_v21, %v734_v20  ;;  %s245_s8 = scalar_lea.vmem [#allocation3], %s1258_s13  ;;  %s315_s11 = scalar_lea.vmem [#allocation2], %s1247_s19 }
  0x77   : > { %v735_v23 = vld [vmem:[%s241_s24] ss:$0 sm:$0xff]  ;;  %s249_s16 = scalar_lea.vmem [#allocation3], %s1261_s15  ;;  %s317_s18 = scalar_lea.vmem [#allocation2], %s1250_s21 }
  0x78   : > { %v739_v25 = vld [vmem:[%s313_s14] ss:$0 sm:$0xff]  ;;  %v304_v27 = vsel %vm303_vm6, %v302_v24, %v735_v23  ;;  %s319_s12 = scalar_lea.vmem [#allocation2], %s1253_s23  ;;  %s321_s20 = scalar_lea.vmem [#allocation2], %s1258_s13 }
  0x79   : > { %v736_v26 = vld [vmem:[%s245_s8] ss:$0 sm:$0xff]  ;;  %v369_v29 = vsel %vm297_vm3, %v312_v22, %v739_v25  ;;  %s253_s19 = scalar_lea.vmem [#allocation3], %s1267_s17  ;;  %s323_s30 = scalar_lea.vmem [#allocation2], %s1261_s15 }
  0x7a   : > { %v740_v28 = vld [vmem:[%s315_s11] ss:$0 sm:$0xff]  ;;  %v306_v31 = vsel %vm305_vm7, %v304_v27, %v736_v26  ;;  %s325_s21 = scalar_lea.vmem [#allocation2], %s1267_s17  ;;  %s1036_s23 = smov 96  }
  0x7b   : > { %v737_v30 = vld [vmem:[%s249_s16] ss:$0 sm:$0xff]  ;;  %v370_v33 = vsel %vm299_vm4, %v369_v29, %v740_v28  ;;  %s1037_s24 = smov 64   ;;  %s1038_s14 = smov 32  }
  0x7c   : > { %v741_v32 = vld [vmem:[%s317_s18] ss:$0 sm:$0xff]  ;;  %v308_v34 = vsel %vm307_vm8, %v306_v31, %v737_v30  ;;  %s756_s8 = scalar_lea.vmem [#allocation2], %s1025_s28  ;;  %s753_s11 = sshll.u32 %s1098_s0, 4 }
  0x7d   : > { %v742_v35 = vld [vmem:[%s319_s12] ss:$0 sm:$0xff]  ;;  %v371_v37 = vsel %vm301_vm5, %v370_v33, %v741_v32  ;;  %s632_s16 = sshll.u32 %s201_s6, 4  ;;  %s759_s18 = scalar_lea.vmem [#allocation3], %s1025_s28  ;;  %s1321_s16 = int_to_ptr.vmem [resolvable:$true] %s632_s16 }
  0x7e   : > { %v743_v36 = vld [vmem:[%s321_s20] ss:$0 sm:$0xff]  ;;  %v372_v40 = vsel %vm303_vm6, %v371_v37, %v742_v35  ;;  %s620_s0 = scalar_lea.sflag [#allocation8], %s1206_s9 }
  0x7f   : > { %v738_v38 = vld [vmem:[%s253_s19] ss:$0 sm:$0xff]  ;;  %v373_v43 = vsel %vm305_vm7, %v372_v40, %v743_v36  ;;  %s1319_s19 = scalar_lea.hbm %s1369_s4, %s753_s11 }
  0x80   : > { %v744_v39 = vld [vmem:[%s323_s30] ss:$0 sm:$0xff]  ;;  %v310_v41 = vsel %vm309_vm9, %v308_v34, %v738_v38  ;;  %s953_s30 = scalar_lea.vmem %s1321_s16, 16 }
  0x81   : > { %v745_v42 = vld [vmem:[%s325_s21] ss:$0 sm:$0xff]  ;;  %792 = vmatmul.mubr.msk.f32.vlgmr.msra.gmra.mrb[0].mxu1 %vm382_vm2, %v310_v41  ;;  %v374_v44 = vsel %vm307_vm8, %v373_v43, %v744_v39  ;;  %p954_p7 = scmp.ne.s32.totalorder %s1321_s16, %s953_s30  ;;  %s1039_s21 = smov [#allocation11]  }
  0x82   : > { %v375_v45 = vsel %vm309_vm9, %v374_v44, %v745_v42 }
  0x83   : > { %571 = vrot.lane.b32.xlu0 %v375_v45, %s1036_s23  ;;  %p955_p9 = pnand %p954_p7, %p1161_p1 }
  0x85   : > { %p956_p12 = pneg %p955_p9 }
  0xf5   : > { %v572_v8 = vpop.permute.xlu0 %571 }
 0x147   : > { %v452_v47 = vpop.f32.mrb[0].mxu0 }
 0x148   : > { %v782_v50 = vpop.f32.mrb[1].mxu0  ;;  %v453_v51 = vadd.f32 %v452_v47, %v381_v49 }
 0x14a   : > { %v557_v54 = vrot.slane %v453_v51, %v556_v52 }
 0x154   : > { %v534_v55 = vpop.f32.mrb[0].mxu1 }
 0x155   : > { %v535_v56 = vadd.f32 %v747_v53, %v534_v55  ;;  %v793_v57 = vpop.f32.mrb[1].mxu1 }
 0x157   : > { %v539_v58 = vsel %vm538_vm10, %v535_v56, 0.0  ;;  %v558_v59 = vadd.f32 %v557_v54, %v535_v56 }
 0x158   : > { %v540_v60 = vrot.slane %v539_v58, 4 }
 0x159   : > { %v750_v61 = vmul.f32 -1.442695, %v558_v59 }
 0x15a   : > { %v541_v62 = vadd.f32 %v540_v60, %v539_v58 }
 0x15b   : > { %873 = vpow2.f32 %v750_v61 }
 0x15c   : > { %v542_v63 = vrot.slane %v541_v62, 2 }
 0x15e   : > { %v543_v0 = vadd.f32 %v542_v63, %v541_v62 }
 0x160   : > { %v544_v1 = vrot.slane %v543_v0, 1 }
 0x162   : > { %v545_v2 = vadd.f32 %v544_v1, %v543_v0 }
 0x164   : > { %v546_v3 = vadd.f32 %v545_v2, %v453_v51 }
 0x165   : > { %v874_v4 = vpop.eup %873 }
 0x166   : > { %v749_v5 = vmul.f32 -1.442695, %v546_v3  ;;  %875 = vtanh.f32 %v546_v3  ;;  %v562_v6 = vadd.f32 1.0, %v874_v4 }
 0x168   : > { %877 = vpow2.f32 %v749_v5 }
 0x169   : > { %879 = vrcp.f32 %v562_v6 }
 0x170   : > { %v876_v7 = vpop.eup %875 }
 0x171   : > { %566 = vrot.lane.b32.xlu0 %v876_v7, %s1037_s24 }
 0x172   : > { %v878_v9 = vpop.eup %877 }
 0x173   : > { %v880_v10 = vpop.eup %879  ;;  %v550_v11 = vadd.f32 1.0, %v878_v9 }
 0x174   : > { %v574_v12 = vmul.f32 %v880_v10, %v572_v8 }
 0x175   : > { %881 = vrcp.f32 %v550_v11 }
 0x176   : > { %v576_v13 = vsel %vm575_vm11, %v574_v12, 0.0 }
 0x177   : > { %v577_v14 = vrot.slane %v576_v13, 4 }
 0x179   : > { %v578_v15 = vadd.f32 %v577_v14, %v576_v13 }
 0x17b   : > { %v579_v16 = vrot.slane %v578_v15, 2 }
 0x17d   : > { %v580_v17 = vadd.f32 %v579_v16, %v578_v15 }
 0x17f   : > { %v882_v18 = vpop.eup %881  ;;  %v581_v19 = vrot.slane %v580_v17, 1 }
 0x180   : > { %604 = vrot.lane.b32.xlu0 %v882_v18, %s1036_s23 }
 0x181   : > { %v582_v20 = vadd.f32 %v581_v19, %v580_v17 }
 0x183   : > { %584 = vrot.lane.b32.xlu1 %v582_v20, %s1038_s14 }
 0x1e3   : > { %v567_v21 = vpop.permute.xlu0 %566 }
 0x1e4   : > { %v569_v22 = vmul.f32 %v882_v18, %v567_v21 }
 0x1f2   : > { %v605_v28 = vpop.permute.xlu0 %604 }
 0x1f5   : > { %v585_v23 = vpop.permute.xlu1 %584 }
 0x1f6   : > { %v587_v24 = vadd.f32 %v585_v23, %v569_v22 }
 0x1f8   : > { %883 = vtanh.f32 %v587_v24  ;;  %758 = vst.msk [vmem:[%s756_s8 - $0x1] sm:$0x1] %vm595_vm12, %v587_v24 }
 0x202   : > { %v884_v25 = vpop.eup %883 }
 0x203   : > { %590 = vrot.lane.b32.xlu1 %v884_v25, %s1038_s14 }
 0x207   : > { %608 = vrot.lane.b32.xlu1 %v587_v24, %s1038_s14 }
 0x275   : > { %v591_v26 = vpop.permute.xlu1 %590 }
 0x276   : > { %v593_v27 = vmul.f32 %v882_v18, %v591_v26 }
 0x278   : > { %598 = vrot.lane.b32.xlu1 %v593_v27, %s1036_s23  ;;  %611 = vrot.lane.b32.xlu0 %v593_v27, %s1038_s14  ;;  %s957_s23 = sshll.u32 %s1039_s21, 4  ;;  %s958_s23 = int_to_ptr.vmem [resolvable:$false] %s957_s23 }
 0x279   : > { %v609_v29 = vpop.permute.xlu1 %608  ;;  %s959_s13 = scalar_lea.vmem %s958_s23, 32  ;;  %p960_p2 = scmp.lt.s32.totalorder %s1321_s16, %s958_s23 }
 0x27a   : > { %v614_v30 = vsel %vm382_vm2, %v605_v28, %v609_v29  ;;  %p961_p6 = scmp.lt.s32.totalorder %s959_s13, %s953_s30 }
 0x27c   : > { %p962_p10 = por %p961_p6, %p960_p2 }
 0x27e   : > { %p963_p13 = pnand %p962_p10, %p956_p12 }
 0x2ea   : > { %v612_v31 = vpop.permute.xlu0 %611  ;;  %v599_v32 = vpop.permute.xlu1 %598 }
 0x2eb   : > { %v616_v33 = vsel %vm615_vm13, %v614_v30, %v612_v31  ;;  %761 = vst.msk [vmem:[%s759_s18 - $0x1] sm:$0x1] %vm595_vm12, %v599_v32 }
 0x2ec   : > { %v617_v34 = vsel %vm538_vm10, %v616_v33, 0.0 }
 0x2ed   : > { %618 = vst [vmem:[%s201_s6] sm:$0x1] %v617_v34 }
 0x2ee   : > { %966 = shalt.err (!%p963_p13)
}
 0x2ef   : > { %s967_s9 = scalar_lea.hbm %s1319_s19, 16  ;;  %s971_s17 = scalar_lea.hbm %s1369_s4, 112 }
 0x2f0   : > { %p968_p11 = scmp.ne.s32.totalorder %s1319_s19, %s967_s9  ;;  %p972_p5 = scmp.lt.u32.totalorder %s1319_s19, %s1369_s4 }
 0x2f1   : > { %p973_p0 = scmp.lt.u32.totalorder %s971_s17, %s967_s9  ;;  %p975_p7 = scmp.lt.u32.totalorder %s967_s9, %s1319_s19 }
 0x2f2   : > { %p969_p8 = pnand %p968_p11, %p1161_p1 }
 0x2f3   : > { %p974_p4 = por %p973_p0, %p972_p5 }
 0x2f4   : > { %p970_p3 = pneg %p969_p8 }
 0x2f5   : > { %p976_p9 = por %p975_p7, %p974_p4 }
 0x2f7   : > { %p977_p12 = pnand %p976_p9, %p970_p3 }
 0x2f9   : > { %980 = shalt.err (!%p977_p12)
}
 0x2fa   : > { %812 = dma.vmem_to_hbm [thread:$0]  (%p1161_p1), %s1321_s16, 16, %s1319_s19, %s620_s0  }
 0x2fb PF: > { %p829_p2 = scmp.ge.s32.totalorder %s1025_s28, 2  ;;  %s644_s14 = sand.u32 1, %s1013_s25  }
 0x2fc   : > { %p1385_p6 = scmp.ne.s32.totalorder %s1374_s5, 0  ;;  %s645_s8 = scalar_lea.sflag [#allocation8], %s644_s14 }
 0x2fe   : > { %p823_p10 = pnand %p829_p2, %p1385_p6 }
 0x300   : > { %1008 = dma.done.wait (!%p823_p10), %s645_s8, 16  }
 0x301   : > { %1010 = vsyncadd (!%p823_p10), %s645_s8, 4294967280  ;;  %p22_p13 = scmp.ge.s32.totalorder %s1131_s10, 9   ;;  %s1386_s25 = smov %s1017_s26 }
 0x302   : > { %s1387_s26 = smov %s1021_s27  ;;  %s1388_s27 = smov %s1157_s29 }
 0x303   : > { %s1389_s28 = smov %s1131_s10  ;;  %24 = sbr.rel (!%p22_p13) target bundleno = 18 (0x12), region = 103 }
 0x30a   :  { %649 = vsyncpa [#allocation7], 1 }
 0x30b   :  { %651 = vsyncpa [#allocation7 + $0x1], 1 }
 0x30c   :  { %652 = vsyncpa [#allocation10], 1 }
 0x30d   :  { %653 = vsyncpa [#allocation8], 1 }
 0x30e   :  { %655 = vsyncpa [#allocation8 + $0x1], 1 }

</bundles_post_ra>
